<compile_context>
chip_gen: v6e
topology: v6e:2x2x1
jax: 0.10.0
libtpu: 0.0.40
codegen_flags: <defaults>
</compile_context>

<pallas_src>
from functools import partial

import jax
import jax.numpy as jnp
from jax.experimental import pallas as pl
from jax.experimental.pallas import tpu as pltpu

_LANES = 128
_MAX_TILE_ROWS = 1024   # 1024 x 128 f32 block = 512 KiB; no benefit beyond this
                        # and it fits every generation's scoped VMEM with room.


def _pick_tile_rows(rows):
    """Largest power-of-two divisor of `rows` in [8, _MAX_TILE_ROWS]."""
    t = 8
    while t * 2 <= _MAX_TILE_ROWS and rows % (t * 2) == 0:
        t *= 2
    return t


def _partial_sum_kernel(x_ref, psum_ref):
    """Each grid step writes an (8, 128) f32 partial sum of its block."""
    xs = x_ref[...].astype(jnp.float32)
    r, l = xs.shape
    # Sum whole (8, 128) vreg-sized row groups: pure VPU adds, no cross-lane
    # work; the final cross-lane/global reduce happens outside the kernel.
    psum_ref[...] = jnp.sum(xs.reshape(r // 8, 8, l), axis=0)


def _replace_kernel(mean_ref, x_ref, bits_ref, o_ref, *, thresh):
    """drop = bits < thresh  (P(drop) == p);  out = where(drop, mean, x)."""
    drop = bits_ref[...] < jnp.uint32(thresh)
    mean = mean_ref[0, 0].astype(o_ref.dtype)
    o_ref[...] = jnp.where(drop, mean, x_ref[...])


def mean_drop(x, p=0.0, seed=0, training=True):
    """JAX/Pallas equivalent of MeanDrop.forward."""
    if (not training) or p <= 0.0:
        return x

    orig_shape = x.shape
    orig_dtype = x.dtype
    total = x.size
    assert total % _LANES == 0, "demo assumes total elements divisible by 128"
    rows = total // _LANES
    assert rows % 8 == 0, "demo assumes rows divisible by 8"
    x2 = x.reshape(rows, _LANES)

    tile_rows = _pick_tile_rows(rows)
    num_blocks = rows // tile_rows
    grid = (num_blocks,)

    # ---- pass 1: parallel per-block partial sums -> global mean ----
    partials = pl.pallas_call(
        _partial_sum_kernel,
        out_shape=jax.ShapeDtypeStruct((num_blocks * 8, _LANES), jnp.float32),
        grid=grid,
        in_specs=[pl.BlockSpec((tile_rows, _LANES), lambda i: (i, 0))],
        out_specs=pl.BlockSpec((8, _LANES), lambda i: (i, 0)),
        compiler_params=pltpu.CompilerParams(dimension_semantics=("parallel",)),
    )(x2)
    mean = (jnp.sum(partials) / jnp.float32(total)).reshape(1, 1)  # (1,1) f32

    if p >= 1.0:  # exact p == 1.0 drops everything
        return jnp.full(orig_shape, mean[0, 0], dtype=orig_dtype)

    # ---- pass 2: bernoulli(p) replace-with-mean (elementwise) ----
    thresh = min(int(round(p * (2 ** 32))), 2 ** 32 - 1)
    bits = jax.random.bits(jax.random.PRNGKey(seed), shape=(rows, _LANES),
                           dtype=jnp.uint32)

    out2 = pl.pallas_call(
        partial(_replace_kernel, thresh=thresh),
        out_shape=jax.ShapeDtypeStruct((rows, _LANES), orig_dtype),
        grid=grid,
        in_specs=[
            pl.BlockSpec(memory_space=pltpu.MemorySpace.SMEM),    # mean (1,1)
            pl.BlockSpec((tile_rows, _LANES), lambda i: (i, 0)),  # x
            pl.BlockSpec((tile_rows, _LANES), lambda i: (i, 0)),  # random bits
        ],
        out_specs=pl.BlockSpec((tile_rows, _LANES), lambda i: (i, 0)),
        compiler_params=pltpu.CompilerParams(dimension_semantics=("parallel",)),
    )(mean, x2, bits)

    return out2.reshape(orig_shape)


if __name__ == "__main__":
    key = jax.random.PRNGKey(0)
    # NCHW, like the PyTorch module would see: [B=2, C=4, H=16, W=16]
    x = jax.random.normal(key, (2, 4, 16, 16), dtype=jnp.float32)
    p = 0.25

    y = jax.block_until_ready(mean_drop(x, p=p, seed=0, training=True))

    # light sanity checks
    assert y.shape == x.shape and y.dtype == x.dtype
    mean_val = jnp.mean(x.astype(jnp.float32))
    changed = y != x
    # every changed element must equal the global mean (within f32 tolerance)
    assert bool(jnp.all(jnp.where(changed,
                                  jnp.isclose(y, mean_val, rtol=1e-5, atol=1e-5),
                                  True)))
    # with p=0.25 over 2048 elements, some but not all elements change
    n_changed = int(jnp.sum(changed))
    assert 0 < n_changed < x.size
    assert bool(jnp.all(jnp.isfinite(y)))

    # eval mode is identity
    y_eval = jax.block_until_ready(mean_drop(x, p=p, seed=0, training=False))
    assert bool(jnp.all(y_eval == x))

    print("KERNEL_OK")
</pallas_src>

<mosaic_0001>
module attributes {stable_mosaic.version = 11 : i64} {
  func.func @_partial_sum_kernel(%arg0: i32, %arg1: memref<16x128xf32, #tpu.memory_space<vmem>>, %arg2: memref<8x128xf32, #tpu.memory_space<vmem>>) attributes {dimension_semantics = [#tpu.dimension_semantics<parallel>], iteration_bounds = array<i64: 1>, scalar_prefetch = 0 : i64, scratch_operands = 0 : i64, tpu.core_type = #tpu.core_type<tc>, window_params = [{transform_indices = @transform_0, window_bounds = array<i64: 16, 128>}, {transform_indices = @transform_1, window_bounds = array<i64: 8, 128>}]} {
    %c0 = arith.constant 0 : index
    %c0_0 = arith.constant 0 : index
    %0 = vector.load %arg1[%c0, %c0_0] : memref<16x128xf32, #tpu.memory_space<vmem>>, vector<16x128xf32>
    %1 = vector.shape_cast %0 : vector<16x128xf32> to vector<2x8x128xf32>
    %cst = arith.constant dense<0.000000e+00> : vector<8x128xf32>
    %2 = vector.multi_reduction <add>, %1, %cst [0] : vector<2x8x128xf32> to vector<8x128xf32>
    %c0_1 = arith.constant 0 : index
    %c0_2 = arith.constant 0 : index
    %3 = vector.load %arg2[%c0_1, %c0_2] : memref<8x128xf32, #tpu.memory_space<vmem>>, vector<8x128xf32>
    tpu.vector_store %arg2[%c0_1, %c0_2], %2 {strides = array<i32>} : memref<8x128xf32, #tpu.memory_space<vmem>>, vector<8x128xf32>,
    return
  }
  func.func @transform_0(%arg0: i32) -> (i32, i32) {
    %c0_i32 = arith.constant 0 : i32
    %c0_i32_0 = arith.constant 0 : i32
    return %arg0, %c0_i32 : i32, i32
  }
  func.func @transform_1(%arg0: i32) -> (i32, i32) {
    %c0_i32 = arith.constant 0 : i32
    %c0_i32_0 = arith.constant 0 : i32
    return %arg0, %c0_i32 : i32, i32
  }
}

</mosaic_0001>

<bundles_post_ra>
// kernel: tpu_custom_call.1
= control target key start
LH: loop header
LB: loop body
LE: loop exit
PB: predicated region body
PF: predicated region fallthrough
CT: control target
= control target key end

     0   :  { %6 = vsyncpa [#allocation3], 0  ;;  %s110_s0 = inlined_call_operand.hbm [shape: f32[16,128], index: 0, kind: input, shape index: {}]   ;;  %s111_s1 = inlined_call_operand.hbm [shape: f32[8,128], index: 1, kind: output, shape index: {}]  }
   0x1   :  { %7 = vsyncpa [#allocation4], 0  ;;  %s90_s6 = smov [#allocation2]  }
   0x2   :  { %s13_s7 = sshll.u32 %s90_s6, 4  ;;  %s14_s7 = int_to_ptr.vmem [resolvable:$true] %s13_s7 }
   0x3   :  { %s54_s8 = scalar_lea.vmem %s14_s7, 256  ;;  %p59_p1 = scmp.lt.s32.totalorder %s14_s7, %s14_s7 }
   0x4   :  { %p55_p0 = scmp.ne.s32.totalorder %s14_s7, %s54_s8  ;;  %p60_p2 = scmp.lt.s32.totalorder %s54_s8, %s54_s8 }
   0x6   :  { %p61_p3 = por %p60_p2, %p59_p1 }
   0x8   :  { %p62_p4 = pnand %p61_p3, %p55_p0 }
   0xa   :  { %65 = shalt.err (!%p62_p4)
}
   0xb   :  { %s91_s9 = smov 128   ;;  %s92_s10 = smov 8  }
   0xc   :  { %19 = dma.hbm_to_vmem [thread:$0]  %s110_s0, 256, %s14_s7, [#allocation3], %s91_s9, %s91_s9, %s92_s10  }
   0xd   :  { %86 = dma.done.wait [#allocation3], 256  }
   0xe   :  { %87 = vsyncadd [#allocation3], 4294967040  ;;  %s93_s13 = smov [#allocation5]   ;;  %v23_v0 = vld [vmem:[#allocation2] sm:$0xff]  ;;  %v24_v1 = vld [vmem:[#allocation2 + $0x8] sm:$0xff] }
   0xf   :  { %s33_s14 = sshll.u32 %s93_s13, 4  ;;  %v25_v2 = vadd.f32 %v24_v1, %v23_v0  ;;  %s34_s14 = int_to_ptr.vmem [resolvable:$true] %s33_s14 }
  0x10   :  { %s66_s15 = scalar_lea.vmem %s34_s14, 128  ;;  %p71_p6 = scmp.lt.s32.totalorder %s34_s14, %s34_s14 }
  0x11   :  { %26 = vst [vmem:[#allocation5] sm:$0xff] %v25_v2  ;;  %p67_p5 = scmp.ne.s32.totalorder %s34_s14, %s66_s15  ;;  %p72_p7 = scmp.lt.s32.totalorder %s66_s15, %s66_s15 }
  0x13   :  { %p73_p8 = por %p72_p7, %p71_p6 }
  0x15   :  { %p74_p9 = pnand %p73_p8, %p67_p5 }
  0x17   :  { %77 = shalt.err (!%p74_p9)
}
  0x18   :  { %36 = dma.vmem_to_hbm [thread:$0]  %s34_s14, 128, %s111_s1, [#allocation4]  }
  0x19   :  { %88 = dma.done.wait [#allocation4], 128  }
  0x1a   :  { %89 = vsyncadd [#allocation4], 4294967168 }
  0x1b   :  { %40 = vsyncpa [#allocation3], 1 }
  0x1c   :  { %41 = vsyncpa [#allocation4], 1 }

</bundles_post_ra>
